<compile_context>
chip_gen: v6e
topology: v6e:2x2x1
jax: 0.10.0
libtpu: 0.0.40
codegen_flags: <defaults>
</compile_context>

<pallas_src>
import functools

import jax
import jax.numpy as jnp
from jax.experimental import pallas as pl
from jax.experimental.pallas import tpu as pltpu

_NEG = -1e30  # plain Python float -> baked-in literal (no captured jax constant)


def _max_topk_svm_kernel(x_ref, y_ref, loss_ref, *, k, alpha):
    c, tm = x_ref.shape

    x = x_ref[...].astype(jnp.float32)                      # (C, tm), samples on lanes
    y = y_ref[...]                                          # (1, tm) int32

    cls = jax.lax.broadcasted_iota(jnp.int32, (c, tm), 0)   # class index on sublanes
    gt = cls == y                                           # (C, tm) ground-truth mask

    # ground-truth score per sample
    x2 = jnp.sum(jnp.where(gt, x, 0.0), axis=0, keepdims=True)        # (1, tm)

    # non-GT scores; GT row excluded via large negative sentinel.
    # alpha is folded out of the (C, tm) array and re-added on the (1, tm) result.
    work = jnp.where(gt, _NEG, x)                                      # (C, tm)

    # Iteratively extract the k largest non-GT scores. Exactly one element is removed
    # per iteration (ties broken by smallest class index), so the extracted multiset
    # matches lax.top_k exactly, including duplicated logits.
    sum_k = jnp.zeros((1, tm), jnp.float32)
    sum_km1 = jnp.zeros((1, tm), jnp.float32)
    for j in range(k):
        m = jnp.max(work, axis=0, keepdims=True)                       # sublane reduce
        sum_k = sum_k + m
        if j < k - 1:
            sum_km1 = sum_km1 + m
            hit = work == m
            first = jnp.min(jnp.where(hit, cls, c), axis=0, keepdims=True)
            work = jnp.where(cls == first, _NEG, work)                 # remove one element

    inv_k = 1.0 / k
    max_1 = sum_k * inv_k + alpha            # mean of top-k of (x_1 + alpha)
    max_2 = (sum_km1 + x2) * inv_k           # (sum of top-(k-1) of x_1 + x_2) / k
    loss_ref[...] = jnp.maximum(max_1 - max_2, 0.0)                    # (1, tm), lane-dense store


def _pick_tm(n, c, itemsize, tm=None):
    """Lane-tile size: big enough that each grid step moves MiBs of x, small enough
    that double-buffered input + in-kernel f32 temporaries fit a conservative VMEM
    budget (works under v7x's 64 MiB physical and v5e's raised scoped limit)."""
    n_ceil = pl.cdiv(n, 128) * 128
    if tm is not None:
        tm = max(128, (int(tm) // 128) * 128)
        return min(tm, n_ceil)
    target_x_block = 4 << 20                  # aim for ~4 MiB of x per grid step
    vmem_budget = 24 << 20                    # double-buffered input + f32 temporaries
    # bytes per lane: 2x input (double buffer) + ~6 full-height f32/i32 temporaries
    # (x_f32, gt mask, work, per-iteration temps, iota) + small (1, tm) buffers.
    per_lane = 2 * c * itemsize + 6 * c * 4 + 32
    tm = min(target_x_block // (c * itemsize), vmem_budget // per_lane, 65536)
    tm = max(128, (tm // 128) * 128)
    # keep >= 2 grid steps when the problem allows (v7x: 2 TensorCores share the grid)
    tm_half = max(128, pl.cdiv(pl.cdiv(n, 2), 128) * 128)
    return min(tm, tm_half)


def max_topk_svm(x, y, n_classes, k=5, alpha=None, weight=None, reduction="mean", tm=None):
    """Forward pass of MaxTopkSVM (hard top-k SVM loss)."""
    assert reduction in ("mean", "sum", "none")
    assert isinstance(n_classes, int) and n_classes > 0
    assert 1 <= k <= n_classes - 1, "need k <= n_classes - 1 (top-k over non-GT classes)"
    alpha = 1.0 if alpha is None else float(alpha)
    assert alpha >= 0
    if weight is not None:
        assert weight.ndim == 1 and weight.shape[0] == n_classes

    c = n_classes
    x_size = None
    if x.ndim > 2:
        # torch: x.transpose(1, -1).reshape(-1, C); x_size = shape after transpose minus C.
        assert x.shape[1] == c
        x_size = (x.shape[0], x.shape[-1]) + tuple(x.shape[2:-1])
        # Build the class-major matrix directly (single transpose copy) instead of
        # swapaxes -> reshape -> transpose.  Columns are ordered (n, d2, ..., d_last);
        # labels are permuted to match, so mean/sum/weight are unaffected and the
        # 'none' output is permuted back to torch order below.
        xt = jnp.moveaxis(x, 1, 0).reshape(c, -1)             # (C, N*spatial), native dtype
        y_k = jnp.moveaxis(y.reshape(x_size), 1, -1).reshape(-1)
    else:
        assert x.shape[-1] == c
        xt = jnp.transpose(x)                                 # (C, N), native dtype
        # TODO(synk): have the upstream producer emit class-major logits so this
        # transpose (one extra HBM pass over x) disappears entirely.
        y_k = y.reshape(-1)
    y_k = y_k.astype(jnp.int32)

    n = xt.shape[1]
    n_work = n
    if n < 128:  # tiny-problem guard: keep lane blocks at least one full vreg wide
        xt = jnp.pad(xt, ((0, 0), (0, 128 - n)))
        y_k = jnp.pad(y_k, (0, 128 - n))
        n_work = 128

    itemsize = jnp.dtype(xt.dtype).itemsize
    tm_sel = _pick_tm(n_work, c, itemsize, tm)
    grid = pl.cdiv(n_work, tm_sel)   # ragged final block handled by Pallas (no wrapper pad)

    kernel = functools.partial(_max_topk_svm_kernel, k=k, alpha=alpha)
    cost = pl.CostEstimate(
        flops=(3 * k + 6) * n_work * c,
        transcendentals=0,
        bytes_accessed=n_work * c * itemsize + n_work * 4 + n_work * 4,
    )

    per_sample = pl.pallas_call(
        kernel,
        out_shape=jax.ShapeDtypeStruct((1, n_work), jnp.float32),
        grid_spec=pltpu.PrefetchScalarGridSpec(
            num_scalar_prefetch=0,
            grid=(grid,),
            in_specs=[
                pl.BlockSpec((c, tm_sel), lambda i: (0, i)),
                pl.BlockSpec((1, tm_sel), lambda i: (0, i)),
            ],
            out_specs=pl.BlockSpec((1, tm_sel), lambda i: (0, i)),
        ),
        compiler_params=pltpu.CompilerParams(
            dimension_semantics=("parallel",),
            vmem_limit_bytes=40 * 1024 * 1024,
        ),
        cost_estimate=cost,
    )(xt, y_k.reshape(1, n_work))

    output = per_sample[0, :n]                               # drop pad lanes (if any)
    if weight is not None:
        output = weight[y_k[:n]] * output
    if reduction == "mean":
        return output.mean()
    if reduction == "sum":
        return output.sum()
    if x_size is not None:
        # columns were (n, d2, ..., d_last); torch expects (n, d_last, d2, ..., d_{-2})
        out_nd = output.reshape((x.shape[0],) + tuple(x.shape[2:]))
        return jnp.moveaxis(out_nd, -1, 1)
    return output


def _reference(x, y, n_classes, k, alpha):
    """Pure-JAX reference of MaxTopkSVM.forward with reduction='mean'."""
    if x.ndim > 2:
        x = jnp.swapaxes(x, 1, -1)
        x = x.reshape(-1, x.shape[-1])
        y = y.reshape(-1)
    mask = jnp.arange(n_classes)[None, :] == y[:, None]
    x2 = jnp.sum(jnp.where(mask, x, 0.0), axis=-1)
    x1 = jnp.where(mask, -jnp.inf, x)
    max_1 = jax.lax.top_k(x1 + alpha, k)[0].mean(axis=-1)
    max_2 = (jax.lax.top_k(x1, k - 1)[0].sum(axis=-1) + x2) / k
    return jnp.maximum(max_1 - max_2, 0.0).mean()


if __name__ == "__main__":
    key = jax.random.PRNGKey(0)
    B, C, H, W = 2, 16, 8, 8          # n_classes = C = 16
    n_classes, k, alpha = C, 5, None  # module defaults: alpha=None -> 1.0, k=5

    kx, ky, k2x, k2y = jax.random.split(key, 4)
    x = jax.random.normal(kx, (B, C, H, W), dtype=jnp.float32)
    # labels laid out (B, W, H) to pair with the transpose(1,-1)+reshape row ordering
    y = jax.random.randint(ky, (B, W, H), 0, n_classes, dtype=jnp.int32)

    out = jax.block_until_ready(max_topk_svm(x, y, n_classes=n_classes, k=k, alpha=alpha))
    ref = _reference(x, y, n_classes, k, 1.0)
    assert jnp.allclose(out, ref, atol=1e-5, rtol=1e-5), (float(out), float(ref))

    # 2-D path with a ragged final lane block (n = 200 is not a multiple of the tile)
    x2 = jax.random.normal(k2x, (200, C), dtype=jnp.float32)
    y2 = jax.random.randint(k2y, (200,), 0, n_classes, dtype=jnp.int32)
    out2 = jax.block_until_ready(max_topk_svm(x2, y2, n_classes=n_classes, k=k, alpha=alpha))
    ref2 = _reference(x2, y2, n_classes, k, 1.0)
    assert jnp.allclose(out2, ref2, atol=1e-5, rtol=1e-5), (float(out2), float(ref2))

    print("KERNEL_OK")
</pallas_src>

<mosaic_0001>
module attributes {stable_mosaic.version = 11 : i64} {
  func.func @_max_topk_svm_kernel(%arg0: i32, %arg1: memref<16x128xf32, #tpu.memory_space<vmem>>, %arg2: memref<1x128xi32, #tpu.memory_space<vmem>>, %arg3: memref<1x128xf32, #tpu.memory_space<vmem>>) attributes {dimension_semantics = [#tpu.dimension_semantics<parallel>], iteration_bounds = array<i64: 1>, scalar_prefetch = 0 : i64, scratch_operands = 0 : i64, tpu.core_type = #tpu.core_type<tc>, window_params = [{transform_indices = @transform_0, window_bounds = array<i64: 16, 128>}, {transform_indices = @transform_1, window_bounds = array<i64: 1, 128>}, {transform_indices = @transform_2, window_bounds = array<i64: 1, 128>}]} {
    %c0 = arith.constant 0 : index
    %c0_0 = arith.constant 0 : index
    %0 = vector.load %arg1[%c0, %c0_0] : memref<16x128xf32, #tpu.memory_space<vmem>>, vector<16x128xf32>
    %c0_1 = arith.constant 0 : index
    %c0_2 = arith.constant 0 : index
    %1 = vector.load %arg2[%c0_1, %c0_2] : memref<1x128xi32, #tpu.memory_space<vmem>>, vector<1x128xi32>
    %2 = tpu.iota {dimensions = array<i32: 0>} : vector<16x128xi32>
    %3 = vector.broadcast %1 : vector<1x128xi32> to vector<16x128xi32>
    %4 = arith.cmpi eq, %2, %3 : vector<16x128xi32>
    %cst = arith.constant 0.000000e+00 : f32
    %5 = vector.broadcast %cst : f32 to vector<16x128xf32>
    %6 = arith.select %4, %0, %5 : vector<16x128xi1>, vector<16x128xf32>
    %cst_3 = arith.constant dense<0.000000e+00> : vector<128xf32>
    %7 = vector.multi_reduction <add>, %6, %cst_3 [0] : vector<16x128xf32> to vector<128xf32>
    %8 = vector.shape_cast %7 : vector<128xf32> to vector<1x128xf32>
    %cst_4 = arith.constant -1.000000e+30 : f32
    %9 = vector.broadcast %cst_4 : f32 to vector<16x128xf32>
    %10 = arith.select %4, %9, %0 : vector<16x128xi1>, vector<16x128xf32>
    %cst_5 = arith.constant 0.000000e+00 : f32
    %11 = vector.broadcast %cst_5 : f32 to vector<1x128xf32>
    %cst_6 = arith.constant 0.000000e+00 : f32
    %12 = vector.broadcast %cst_6 : f32 to vector<1x128xf32>
    %cst_7 = arith.constant dense<0xFF800000> : vector<128xf32>
    %13 = vector.multi_reduction <maximumf>, %10, %cst_7 [0] : vector<16x128xf32> to vector<128xf32>
    %14 = vector.shape_cast %13 : vector<128xf32> to vector<1x128xf32>
    %15 = arith.addf %11, %14 : vector<1x128xf32>
    %16 = arith.addf %12, %14 : vector<1x128xf32>
    %17 = vector.broadcast %14 : vector<1x128xf32> to vector<16x128xf32>
    %18 = arith.cmpf oeq, %10, %17 : vector<16x128xf32>
    %c16_i32 = arith.constant 16 : i32
    %19 = vector.broadcast %c16_i32 : i32 to vector<16x128xi32>
    %20 = arith.select %18, %2, %19 : vector<16x128xi1>, vector<16x128xi32>
    %cst_8 = arith.constant dense<2147483647> : vector<128xi32>
    %21 = vector.multi_reduction <minsi>, %20, %cst_8 [0] : vector<16x128xi32> to vector<128xi32>
    %22 = vector.shape_cast %21 : vector<128xi32> to vector<1x128xi32>
    %23 = vector.broadcast %22 : vector<1x128xi32> to vector<16x128xi32>
    %24 = arith.cmpi eq, %2, %23 : vector<16x128xi32>
    %cst_9 = arith.constant -1.000000e+30 : f32
    %25 = vector.broadcast %cst_9 : f32 to vector<16x128xf32>
    %26 = arith.select %24, %25, %10 : vector<16x128xi1>, vector<16x128xf32>
    %cst_10 = arith.constant dense<0xFF800000> : vector<128xf32>
    %27 = vector.multi_reduction <maximumf>, %26, %cst_10 [0] : vector<16x128xf32> to vector<128xf32>
    %28 = vector.shape_cast %27 : vector<128xf32> to vector<1x128xf32>
    %29 = arith.addf %15, %28 : vector<1x128xf32>
    %30 = arith.addf %16, %28 : vector<1x128xf32>
    %31 = vector.broadcast %28 : vector<1x128xf32> to vector<16x128xf32>
    %32 = arith.cmpf oeq, %26, %31 : vector<16x128xf32>
    %c16_i32_11 = arith.constant 16 : i32
    %33 = vector.broadcast %c16_i32_11 : i32 to vector<16x128xi32>
    %34 = arith.select %32, %2, %33 : vector<16x128xi1>, vector<16x128xi32>
    %cst_12 = arith.constant dense<2147483647> : vector<128xi32>
    %35 = vector.multi_reduction <minsi>, %34, %cst_12 [0] : vector<16x128xi32> to vector<128xi32>
    %36 = vector.shape_cast %35 : vector<128xi32> to vector<1x128xi32>
    %37 = vector.broadcast %36 : vector<1x128xi32> to vector<16x128xi32>
    %38 = arith.cmpi eq, %2, %37 : vector<16x128xi32>
    %cst_13 = arith.constant -1.000000e+30 : f32
    %39 = vector.broadcast %cst_13 : f32 to vector<16x128xf32>
    %40 = arith.select %38, %39, %26 : vector<16x128xi1>, vector<16x128xf32>
    %cst_14 = arith.constant dense<0xFF800000> : vector<128xf32>
    %41 = vector.multi_reduction <maximumf>, %40, %cst_14 [0] : vector<16x128xf32> to vector<128xf32>
    %42 = vector.shape_cast %41 : vector<128xf32> to vector<1x128xf32>
    %43 = arith.addf %29, %42 : vector<1x128xf32>
    %44 = arith.addf %30, %42 : vector<1x128xf32>
    %45 = vector.broadcast %42 : vector<1x128xf32> to vector<16x128xf32>
    %46 = arith.cmpf oeq, %40, %45 : vector<16x128xf32>
    %c16_i32_15 = arith.constant 16 : i32
    %47 = vector.broadcast %c16_i32_15 : i32 to vector<16x128xi32>
    %48 = arith.select %46, %2, %47 : vector<16x128xi1>, vector<16x128xi32>
    %cst_16 = arith.constant dense<2147483647> : vector<128xi32>
    %49 = vector.multi_reduction <minsi>, %48, %cst_16 [0] : vector<16x128xi32> to vector<128xi32>
    %50 = vector.shape_cast %49 : vector<128xi32> to vector<1x128xi32>
    %51 = vector.broadcast %50 : vector<1x128xi32> to vector<16x128xi32>
    %52 = arith.cmpi eq, %2, %51 : vector<16x128xi32>
    %cst_17 = arith.constant -1.000000e+30 : f32
    %53 = vector.broadcast %cst_17 : f32 to vector<16x128xf32>
    %54 = arith.select %52, %53, %40 : vector<16x128xi1>, vector<16x128xf32>
    %cst_18 = arith.constant dense<0xFF800000> : vector<128xf32>
    %55 = vector.multi_reduction <maximumf>, %54, %cst_18 [0] : vector<16x128xf32> to vector<128xf32>
    %56 = vector.shape_cast %55 : vector<128xf32> to vector<1x128xf32>
    %57 = arith.addf %43, %56 : vector<1x128xf32>
    %58 = arith.addf %44, %56 : vector<1x128xf32>
    %59 = vector.broadcast %56 : vector<1x128xf32> to vector<16x128xf32>
    %60 = arith.cmpf oeq, %54, %59 : vector<16x128xf32>
    %c16_i32_19 = arith.constant 16 : i32
    %61 = vector.broadcast %c16_i32_19 : i32 to vector<16x128xi32>
    %62 = arith.select %60, %2, %61 : vector<16x128xi1>, vector<16x128xi32>
    %cst_20 = arith.constant dense<2147483647> : vector<128xi32>
    %63 = vector.multi_reduction <minsi>, %62, %cst_20 [0] : vector<16x128xi32> to vector<128xi32>
    %64 = vector.shape_cast %63 : vector<128xi32> to vector<1x128xi32>
    %65 = vector.broadcast %64 : vector<1x128xi32> to vector<16x128xi32>
    %66 = arith.cmpi eq, %2, %65 : vector<16x128xi32>
    %cst_21 = arith.constant -1.000000e+30 : f32
    %67 = vector.broadcast %cst_21 : f32 to vector<16x128xf32>
    %68 = arith.select %66, %67, %54 : vector<16x128xi1>, vector<16x128xf32>
    %cst_22 = arith.constant dense<0xFF800000> : vector<128xf32>
    %69 = vector.multi_reduction <maximumf>, %68, %cst_22 [0] : vector<16x128xf32> to vector<128xf32>
    %70 = vector.shape_cast %69 : vector<128xf32> to vector<1x128xf32>
    %71 = arith.addf %57, %70 : vector<1x128xf32>
    %cst_23 = arith.constant 2.000000e-01 : f32
    %72 = vector.broadcast %cst_23 : f32 to vector<1x128xf32>
    %73 = arith.mulf %71, %72 : vector<1x128xf32>
    %cst_24 = arith.constant 1.000000e+00 : f32
    %74 = vector.broadcast %cst_24 : f32 to vector<1x128xf32>
    %75 = arith.addf %73, %74 : vector<1x128xf32>
    %76 = arith.addf %58, %8 : vector<1x128xf32>
    %cst_25 = arith.constant 2.000000e-01 : f32
    %77 = vector.broadcast %cst_25 : f32 to vector<1x128xf32>
    %78 = arith.mulf %76, %77 : vector<1x128xf32>
    %79 = arith.subf %75, %78 : vector<1x128xf32>
    %cst_26 = arith.constant 0.000000e+00 : f32
    %80 = vector.broadcast %cst_26 : f32 to vector<1x128xf32>
    %81 = arith.maximumf %79, %80 : vector<1x128xf32>
    %c0_27 = arith.constant 0 : index
    %c0_28 = arith.constant 0 : index
    %82 = vector.load %arg3[%c0_27, %c0_28] : memref<1x128xf32, #tpu.memory_space<vmem>>, vector<1x128xf32>
    tpu.vector_store %arg3[%c0_27, %c0_28], %81 {strides = array<i32>} : memref<1x128xf32, #tpu.memory_space<vmem>>, vector<1x128xf32>,
    return
  }
  func.func @transform_0(%arg0: i32) -> (i32, i32) {
    %c0_i32 = arith.constant 0 : i32
    %c0_i32_0 = arith.constant 0 : i32
    return %c0_i32, %arg0 : i32, i32
  }
  func.func @transform_1(%arg0: i32) -> (i32, i32) {
    %c0_i32 = arith.constant 0 : i32
    %c0_i32_0 = arith.constant 0 : i32
    return %c0_i32, %arg0 : i32, i32
  }
  func.func @transform_2(%arg0: i32) -> (i32, i32) {
    %c0_i32 = arith.constant 0 : i32
    %c0_i32_0 = arith.constant 0 : i32
    return %c0_i32, %arg0 : i32, i32
  }
}

</mosaic_0001>

<bundles_post_ra>
// kernel: tpu_custom_call.1
= control target key start
LH: loop header
LB: loop body
LE: loop exit
PB: predicated region body
PF: predicated region fallthrough
CT: control target
= control target key end

     0   :  { %7 = vsyncpa [#allocation3], 0  ;;  %s291_s0 = inlined_call_operand.hbm [shape: f32[16,128], index: 0, kind: input, shape index: {}]   ;;  %s292_s1 = inlined_call_operand.vmem [shape: s32[1,128], index: 1, kind: input, shape index: {}]   ;;  %s293_s2 = inlined_call_operand.hbm [shape: f32[1,128], index: 2, kind: output, shape index: {}]  }
   0x1   :  { %8 = vsyncpa [#allocation4], 0  ;;  %s236_s9 = smov [#allocation2]  }
   0x2   :  { %s14_s10 = sshll.u32 %s236_s9, 4  ;;  %s15_s10 = int_to_ptr.vmem [resolvable:$true] %s14_s10 }
   0x3   :  { %s200_s11 = scalar_lea.vmem %s15_s10, 256  ;;  %p205_p1 = scmp.lt.s32.totalorder %s15_s10, %s15_s10 }
   0x4   :  { %p201_p0 = scmp.ne.s32.totalorder %s15_s10, %s200_s11  ;;  %p206_p2 = scmp.lt.s32.totalorder %s200_s11, %s200_s11 }
   0x6   :  { %p207_p3 = por %p206_p2, %p205_p1 }
   0x8   :  { %p208_p4 = pnand %p207_p3, %p201_p0 }
   0xa   :  { %211 = shalt.err (!%p208_p4)
}
   0xb   :  { %s237_s12 = smov 128   ;;  %s238_s13 = smov 8  }
   0xc   :  { %20 = dma.hbm_to_vmem [thread:$0]  %s291_s0, 256, %s15_s10, [#allocation3], %s237_s12, %s237_s12, %s238_s13  }
   0xd   :  { %232 = dma.done.wait [#allocation3], 256  }
   0xe   :  { %233 = vsyncadd [#allocation3], 4294967040  ;;  %v29_v0 = vlaneseq  ;;  %v26_v3 = vld [vmem:[#allocation2] sm:$0xff]  ;;  %v27_v4 = vld [vmem:[#allocation2 + $0x8] sm:$0xff]  ;;  %s239_s0 = smov [#allocation5]  }
   0xf   :  { %v187_v5 = vld [vmem:[%s292_s1] ss:$0 sm:$0xff]  ;;  %s178_s1 = sshll.u32 %s239_s0, 4  ;;  %s179_s1 = int_to_ptr.vmem [resolvable:$true] %s178_s1 }
  0x10   :  { %v258_v1 = vshrl.u32 %v29_v0, 7  ;;  %s212_s18 = scalar_lea.vmem %s179_s1, 16  ;;  %s216_s19 = scalar_lea.vmem %s179_s1, 32 }
  0x11   :  { %p213_p5 = scmp.ne.s32.totalorder %s179_s1, %s212_s18  ;;  %p217_p6 = scmp.lt.s32.totalorder %s179_s1, %s179_s1 }
  0x12   :  { %v261_v2 = vadd.s32 8, %v258_v1  ;;  %vm36_vm0 = vcmp.eq.s32.totalorder %v258_v1, %v187_v5  ;;  %p218_p7 = scmp.lt.s32.totalorder %s216_s19, %s212_s18 }
  0x13   :  { %v38_v6 = vsel %vm36_vm0, %v26_v3, 0.0  ;;  %v47_v8 = vsel %vm36_vm0, -1e+30, %v26_v3 }
  0x14   :  { %vm37_vm1 = vcmp.eq.s32.totalorder %v261_v2, %v187_v5  ;;  %p219_p8 = por %p218_p7, %p217_p6 }
  0x15   :  { %v39_v7 = vsel %vm37_vm1, %v27_v4, 0.0  ;;  %v48_v9 = vsel %vm37_vm1, -1e+30, %v27_v4 }
  0x16   :  { %v268_v10 = vadd.f32 %v39_v7, %v38_v6  ;;  %v49_v11 = vmax.f32 %v47_v8, %v48_v9  ;;  %p220_p9 = pnand %p219_p8, %p213_p5 }
  0x18   :  { %v50_v12 = vrot.slane %v49_v11, 4  ;;  %v41_v61 = vrot.slane %v268_v10, 4 }
  0x1a   :  { %v51_v13 = vmax.f32 %v49_v11, %v50_v12  ;;  %v42_v0 = vadd.f32 %v41_v61, %v268_v10 }
  0x1c   :  { %v52_v14 = vrot.slane %v51_v13, 2  ;;  %v43_v6 = vrot.slane %v42_v0, 2 }
  0x1e   :  { %v53_v15 = vmax.f32 %v51_v13, %v52_v14 }
  0x20   :  { %v54_v16 = vrot.slane %v53_v15, 1 }
  0x22   :  { %v55_v17 = vmax.f32 %v53_v15, %v54_v16 }
  0x24   :  { %vm57_vm2 = vcmp.eq.f32.partialorder %v47_v8, %v55_v17  ;;  %vm58_vm3 = vcmp.eq.f32.partialorder %v48_v9, %v55_v17 }
  0x25   :  { %v59_v18 = vsel %vm57_vm2, %v258_v1, 16  ;;  %v60_v19 = vsel %vm58_vm3, %v261_v2, 16 }
  0x26   :  { %vm61_vm4 = vcmp.lt.s32.totalorder %v59_v18, %v60_v19 }
  0x27   :  { %v62_v20 = vsel %vm61_vm4, %v59_v18, %v60_v19 }
  0x28   :  { %v63_v21 = vrot.slane %v62_v20, 4 }
  0x2a   :  { %vm64_vm5 = vcmp.lt.s32.totalorder %v62_v20, %v63_v21 }
  0x2b   :  { %v65_v22 = vsel %vm64_vm5, %v62_v20, %v63_v21 }
  0x2c   :  { %v66_v23 = vrot.slane %v65_v22, 2 }
  0x2e   :  { %vm67_vm6 = vcmp.lt.s32.totalorder %v65_v22, %v66_v23 }
  0x2f   :  { %v68_v24 = vsel %vm67_vm6, %v65_v22, %v66_v23 }
  0x30   :  { %v69_v25 = vrot.slane %v68_v24, 1 }
  0x32   :  { %vm70_vm7 = vcmp.lt.s32.totalorder %v68_v24, %v69_v25 }
  0x33   :  { %v71_v26 = vsel %vm70_vm7, %v68_v24, %v69_v25 }
  0x34   :  { %vm72_vm8 = vcmp.eq.s32.totalorder %v258_v1, %v71_v26  ;;  %vm73_vm9 = vcmp.eq.s32.totalorder %v261_v2, %v71_v26 }
  0x35   :  { %v74_v27 = vsel %vm72_vm8, -1e+30, %v47_v8  ;;  %v75_v28 = vsel %vm73_vm9, -1e+30, %v48_v9  ;;  %v44_v9 = vadd.f32 %v43_v6, %v42_v0 }
  0x36   :  { %v76_v29 = vmax.f32 %v74_v27, %v75_v28 }
  0x37   :  { %v45_v13 = vrot.slane %v44_v9, 1 }
  0x38   :  { %v77_v30 = vrot.slane %v76_v29, 4 }
  0x3a   :  { %v78_v31 = vmax.f32 %v76_v29, %v77_v30 }
  0x3c   :  { %v79_v32 = vrot.slane %v78_v31, 2 }
  0x3e   :  { %v80_v33 = vmax.f32 %v78_v31, %v79_v32 }
  0x40   :  { %v81_v34 = vrot.slane %v80_v33, 1 }
  0x42   :  { %v82_v35 = vmax.f32 %v80_v33, %v81_v34 }
  0x44   :  { %v83_v36 = vadd.f32 %v82_v35, %v55_v17  ;;  %vm84_vm10 = vcmp.eq.f32.partialorder %v74_v27, %v82_v35  ;;  %vm85_vm11 = vcmp.eq.f32.partialorder %v75_v28, %v82_v35  ;;  %v46_v17 = vadd.f32 %v45_v13, %v44_v9 }
  0x45   :  { %v86_v37 = vsel %vm84_vm10, %v258_v1, 16  ;;  %v87_v38 = vsel %vm85_vm11, %v261_v2, 16 }
  0x46   :  { %vm88_vm12 = vcmp.lt.s32.totalorder %v86_v37, %v87_v38 }
  0x47   :  { %v89_v39 = vsel %vm88_vm12, %v86_v37, %v87_v38 }
  0x48   :  { %v90_v40 = vrot.slane %v89_v39, 4 }
  0x4a   :  { %vm91_vm13 = vcmp.lt.s32.totalorder %v89_v39, %v90_v40 }
  0x4b   :  { %v92_v41 = vsel %vm91_vm13, %v89_v39, %v90_v40 }
  0x4c   :  { %v93_v42 = vrot.slane %v92_v41, 2 }
  0x4e   :  { %vm94_vm14 = vcmp.lt.s32.totalorder %v92_v41, %v93_v42 }
  0x4f   :  { %v95_v43 = vsel %vm94_vm14, %v92_v41, %v93_v42 }
  0x50   :  { %v96_v44 = vrot.slane %v95_v43, 1 }
  0x52   :  { %vm97_vm15 = vcmp.lt.s32.totalorder %v95_v43, %v96_v44 }
  0x53   :  { %v98_v45 = vsel %vm97_vm15, %v95_v43, %v96_v44 }
  0x54   :  { %vm99_vm0 = vcmp.eq.s32.totalorder %v258_v1, %v98_v45  ;;  %vm100_vm1 = vcmp.eq.s32.totalorder %v261_v2, %v98_v45 }
  0x55   :  { %v101_v46 = vsel %vm99_vm0, -1e+30, %v74_v27  ;;  %v102_v47 = vsel %vm100_vm1, -1e+30, %v75_v28 }
  0x56   :  { %v103_v48 = vmax.f32 %v101_v46, %v102_v47 }
  0x58   :  { %v104_v49 = vrot.slane %v103_v48, 4 }
  0x5a   :  { %v105_v50 = vmax.f32 %v103_v48, %v104_v49 }
  0x5c   :  { %v106_v51 = vrot.slane %v105_v50, 2 }
  0x5e   :  { %v107_v52 = vmax.f32 %v105_v50, %v106_v51 }
  0x60   :  { %v108_v53 = vrot.slane %v107_v52, 1 }
  0x62   :  { %v109_v54 = vmax.f32 %v107_v52, %v108_v53 }
  0x64   :  { %vm111_vm2 = vcmp.eq.f32.partialorder %v101_v46, %v109_v54  ;;  %vm112_vm3 = vcmp.eq.f32.partialorder %v102_v47, %v109_v54  ;;  %v110_v15 = vadd.f32 %v109_v54, %v83_v36 }
  0x65   :  { %v113_v55 = vsel %vm111_vm2, %v258_v1, 16  ;;  %v114_v56 = vsel %vm112_vm3, %v261_v2, 16 }
  0x66   :  { %vm115_vm4 = vcmp.lt.s32.totalorder %v113_v55, %v114_v56 }
  0x67   :  { %v116_v57 = vsel %vm115_vm4, %v113_v55, %v114_v56 }
  0x68   :  { %v117_v58 = vrot.slane %v116_v57, 4 }
  0x6a   :  { %vm118_vm5 = vcmp.lt.s32.totalorder %v116_v57, %v117_v58 }
  0x6b   :  { %v119_v59 = vsel %vm118_vm5, %v116_v57, %v117_v58 }
  0x6c   :  { %v120_v60 = vrot.slane %v119_v59, 2 }
  0x6e   :  { %vm121_vm6 = vcmp.lt.s32.totalorder %v119_v59, %v120_v60 }
  0x6f   :  { %v122_v62 = vsel %vm121_vm6, %v119_v59, %v120_v60 }
  0x70   :  { %v123_v63 = vrot.slane %v122_v62, 1 }
  0x72   :  { %vm124_vm7 = vcmp.lt.s32.totalorder %v122_v62, %v123_v63 }
  0x73   :  { %v125_v3 = vsel %vm124_vm7, %v122_v62, %v123_v63 }
  0x74   :  { %vm126_vm8 = vcmp.eq.s32.totalorder %v258_v1, %v125_v3  ;;  %vm127_vm9 = vcmp.eq.s32.totalorder %v261_v2, %v125_v3 }
  0x75   :  { %v128_v4 = vsel %vm126_vm8, -1e+30, %v101_v46  ;;  %v129_v5 = vsel %vm127_vm9, -1e+30, %v102_v47 }
  0x76   :  { %v130_v7 = vmax.f32 %v128_v4, %v129_v5 }
  0x78   :  { %v131_v8 = vrot.slane %v130_v7, 4 }
  0x7a   :  { %v132_v11 = vmax.f32 %v130_v7, %v131_v8 }
  0x7c   :  { %v133_v12 = vrot.slane %v132_v11, 2 }
  0x7e   :  { %v134_v14 = vmax.f32 %v132_v11, %v133_v12 }
  0x80   :  { %v135_v16 = vrot.slane %v134_v14, 1 }
  0x82   :  { %v136_v10 = vmax.f32 %v134_v14, %v135_v16 }
  0x84   :  { %v137_v18 = vadd.f32 %v136_v10, %v110_v15  ;;  %vm138_vm10 = vcmp.eq.f32.partialorder %v128_v4, %v136_v10  ;;  %vm139_vm11 = vcmp.eq.f32.partialorder %v129_v5, %v136_v10 }
  0x85   :  { %v140_v19 = vsel %vm138_vm10, %v258_v1, 16  ;;  %v141_v20 = vsel %vm139_vm11, %v261_v2, 16 }
  0x86   :  { %vm142_vm12 = vcmp.lt.s32.totalorder %v140_v19, %v141_v20  ;;  %v167_v21 = vadd.f32 %v137_v18, %v46_v17 }
  0x87   :  { %v143_v22 = vsel %vm142_vm12, %v140_v19, %v141_v20 }
  0x88   :  { %v144_v23 = vrot.slane %v143_v22, 4  ;;  %v168_v40 = vmul.f32 0.2, %v167_v21 }
  0x8a   :  { %vm145_vm13 = vcmp.lt.s32.totalorder %v143_v22, %v144_v23 }
  0x8b   :  { %v146_v24 = vsel %vm145_vm13, %v143_v22, %v144_v23 }
  0x8c   :  { %v147_v25 = vrot.slane %v146_v24, 2 }
  0x8e   :  { %vm148_vm14 = vcmp.lt.s32.totalorder %v146_v24, %v147_v25 }
  0x8f   :  { %v149_v26 = vsel %vm148_vm14, %v146_v24, %v147_v25 }
  0x90   :  { %v150_v27 = vrot.slane %v149_v26, 1 }
  0x92   :  { %vm151_vm15 = vcmp.lt.s32.totalorder %v149_v26, %v150_v27 }
  0x93   :  { %v152_v28 = vsel %vm151_vm15, %v149_v26, %v150_v27 }
  0x94   :  { %vm153_vm0 = vcmp.eq.s32.totalorder %v258_v1, %v152_v28  ;;  %vm154_vm1 = vcmp.eq.s32.totalorder %v261_v2, %v152_v28 }
  0x95   :  { %v155_v29 = vsel %vm153_vm0, -1e+30, %v128_v4  ;;  %v156_v30 = vsel %vm154_vm1, -1e+30, %v129_v5 }
  0x96   :  { %v157_v31 = vmax.f32 %v155_v29, %v156_v30 }
  0x98   :  { %v158_v32 = vrot.slane %v157_v31, 4 }
  0x9a   :  { %v159_v33 = vmax.f32 %v157_v31, %v158_v32 }
  0x9c   :  { %v160_v34 = vrot.slane %v159_v33, 2 }
  0x9e   :  { %v161_v35 = vmax.f32 %v159_v33, %v160_v34 }
  0xa0   :  { %v162_v36 = vrot.slane %v161_v35, 1 }
  0xa2   :  { %v163_v37 = vmax.f32 %v161_v35, %v162_v36 }
  0xa4   :  { %v164_v38 = vadd.f32 %v163_v37, %v137_v18 }
  0xa6   :  { %v165_v39 = vmul.f32 0.2, %v164_v38 }
  0xa8   :  { %v166_v41 = vadd.f32 1.0, %v165_v39 }
  0xaa   :  { %v169_v42 = vsub.f32 %v166_v41, %v168_v40 }
  0xac   :  { %v170_v43 = vmax.f32 %v169_v42, 0.0 }
  0xae   :  { %171 = vst [vmem:[#allocation5] sm:$0x1] %v170_v43 }
  0xaf   :  { %223 = shalt.err (!%p220_p9)
}
  0xb0   :  { %181 = dma.vmem_to_hbm [thread:$0]  %s179_s1, 16, %s293_s2, [#allocation4]  }
  0xb1   :  { %234 = dma.done.wait [#allocation4], 16  }
  0xb2   :  { %235 = vsyncadd [#allocation4], 4294967280 }
  0xb3   :  { %185 = vsyncpa [#allocation3], 1 }
  0xb4   :  { %186 = vsyncpa [#allocation4], 1 }

</bundles_post_ra>
